<compile_context>
chip_gen: v7x
topology: tpu7x:2x2x1
jax: 0.10.0
libtpu: 0.0.40
codegen_flags: <defaults>
</compile_context>

<pallas_src>
import functools
import math

import jax
import jax.numpy as jnp
from jax import lax
from jax.experimental import pallas as pl
from jax.experimental.pallas import tpu as pltpu


def _round_up(v, m):
    return (v + m - 1) // m * m


def _choose_tiles(n):
    """Return (q_tile, kv_tile, n_pad).

    Long sequences use MXU-friendly 256/512 tiles; short sequences use a single
    tile padded to the sublane multiple (8).  Padding along the key axis is
    masked inside the attention kernel.
    """
    if n <= 512:
        t = _round_up(max(n, 8), 8)
        return t, t, t
    n_pad = _round_up(n, 512)          # 512 is a multiple of both tile sizes
    return 256, 512, n_pad


# ---------------------------------------------------------------------------
# Fused QKV projection kernel: x @ [Wq | Wk | Wv]  ->  q, k, v   (bf16 out)
# ---------------------------------------------------------------------------
def _qkv_proj_kernel(d_model, x_ref, w_ref, q_ref, k_ref, v_ref):
    qkv = jnp.dot(x_ref[...], w_ref[...], preferred_element_type=jnp.float32)
    # d_model is a multiple of 128 in the intended configs, so these slices
    # land on lane-tile boundaries (no relayout copies).
    q_ref[...] = qkv[:, :d_model].astype(q_ref.dtype)
    k_ref[...] = qkv[:, d_model:2 * d_model].astype(k_ref.dtype)
    v_ref[...] = qkv[:, 2 * d_model:].astype(v_ref.dtype)


def _project_qkv(x_bf16, w_qkv_bf16, row_tile):
    batch, n_pad, d = x_bf16.shape
    num_rows = n_pad // row_tile
    qkv_shape = jax.ShapeDtypeStruct((batch, n_pad, d), jnp.bfloat16)
    return pl.pallas_call(
        functools.partial(_qkv_proj_kernel, d),
        out_shape=(qkv_shape, qkv_shape, qkv_shape),
        grid_spec=pltpu.PrefetchScalarGridSpec(
            num_scalar_prefetch=0,
            grid=(batch, num_rows),
            in_specs=[
                pl.BlockSpec((None, row_tile, d), lambda b, i: (b, i, 0)),
                # Constant block index across the whole grid -> single buffer
                # (double-buffering a constant block is pure VMEM waste).
                pl.BlockSpec((d, 3 * d), lambda b, i: (0, 0),
                             pipeline_mode=pl.Buffered(1)),
            ],
            out_specs=[
                pl.BlockSpec((None, row_tile, d), lambda b, i: (b, i, 0)),
                pl.BlockSpec((None, row_tile, d), lambda b, i: (b, i, 0)),
                pl.BlockSpec((None, row_tile, d), lambda b, i: (b, i, 0)),
            ],
        ),
        compiler_params=pltpu.CompilerParams(
            dimension_semantics=("parallel", "parallel"),
        ),
    )(x_bf16, w_qkv_bf16)


# ---------------------------------------------------------------------------
# Flash-style attention kernel with online softmax over kv tiles.
# ---------------------------------------------------------------------------
def _attn_kernel(n_valid, n_pad, kv_tile, inv_sqrt_d, exact_recip,
                 q_ref, k_ref, v_ref, o_ref, m_sc, l_sc, acc_sc):
    j = pl.program_id(2)

    @pl.when(j == 0)
    def _init():
        m_sc[...] = jnp.full_like(m_sc, -jnp.inf)
        l_sc[...] = jnp.zeros_like(l_sc)
        acc_sc[...] = jnp.zeros_like(acc_sc)

    # s = q @ k^T, contracting last dims (no explicit transpose); bf16 MXU
    # operands, f32 accumulation.
    s = lax.dot_general(
        q_ref[...], k_ref[...],
        dimension_numbers=(((1,), (1,)), ((), ())),
        preferred_element_type=jnp.float32,
    )  # (q_tile, kv_tile)

    if n_pad != n_valid:  # static: mask padded keys out of the softmax
        key_idx = j * kv_tile + lax.broadcasted_iota(jnp.int32, s.shape, 1)
        s = jnp.where(key_idx < n_valid, s, -jnp.inf)

    # Online softmax update (f32 stats).  NOTE: on v6e/v7x the exp could be
    # evaluated in bf16 (EUP binding slot for small d); kept f32 so the same
    # kernel is also correct/fast on v5e (no bf16 EUP/VALU).
    m_new = jnp.maximum(m_sc[...], jnp.max(s, axis=-1, keepdims=True))
    alpha = jnp.exp(m_sc[...] - m_new)
    p = jnp.exp(s - m_new)
    l_sc[...] = alpha * l_sc[...] + jnp.sum(p, axis=-1, keepdims=True)
    acc_sc[...] = alpha * acc_sc[...] + jnp.dot(
        p.astype(jnp.bfloat16), v_ref[...], preferred_element_type=jnp.float32)
    m_sc[...] = m_new

    @pl.when(j == pl.num_programs(2) - 1)
    def _finalize():
        # The module scales by 1/sqrt(d) AFTER the softmax; fold it into the
        # (q_tile, 1) reciprocal of the row sums (O(q_tile) work).
        if exact_recip:
            scale = inv_sqrt_d / l_sc[...]                       # exact (f32 out)
        else:
            scale = pl.reciprocal(l_sc[...], approx=True) * inv_sqrt_d
        o_ref[...] = (acc_sc[...] * scale).astype(o_ref.dtype)


# ---------------------------------------------------------------------------
# Public wrapper
# ---------------------------------------------------------------------------
def self_attention(x, wq_t, wk_t, wv_t):
    """Self-attention matching the PyTorch module.

    x:                 (batch, n, d)
    wq_t, wk_t, wv_t:  (d, d) pre-transposed nn.Linear weights (kernels compute
                       x @ W, equivalent to PyTorch's x @ W.T).
    """
    batch, n, d = x.shape
    out_dtype = x.dtype
    inv_sqrt_d = 1.0 / math.sqrt(d)

    q_tile, kv_tile, n_pad = _choose_tiles(n)
    row_tile = n_pad if n_pad <= 512 else 256

    # bf16 operands for every MXU matmul (accumulation stays f32).
    x_bf16 = x.astype(jnp.bfloat16)
    if n_pad != n:
        x_bf16 = jnp.pad(x_bf16, ((0, 0), (0, n_pad - n), (0, 0)))
    w_qkv = jnp.concatenate([wq_t, wk_t, wv_t], axis=1).astype(jnp.bfloat16)

    # Projections hoisted out of the attention kernel (computed once per token).
    q, k, v = _project_qkv(x_bf16, w_qkv, row_tile)

    num_q = n_pad // q_tile
    num_kv = n_pad // kv_tile

    kernel = functools.partial(
        _attn_kernel, n, n_pad, kv_tile, inv_sqrt_d,
        bool(out_dtype == jnp.float32))

    out = pl.pallas_call(
        kernel,
        out_shape=jax.ShapeDtypeStruct((batch, n_pad, d), out_dtype),
        grid_spec=pltpu.PrefetchScalarGridSpec(
            num_scalar_prefetch=0,
            grid=(batch, num_q, num_kv),
            in_specs=[
                pl.BlockSpec((None, q_tile, d), lambda b, i, j: (b, i, 0)),
                pl.BlockSpec((None, kv_tile, d), lambda b, i, j: (b, j, 0)),
                pl.BlockSpec((None, kv_tile, d), lambda b, i, j: (b, j, 0)),
            ],
            out_specs=pl.BlockSpec((None, q_tile, d), lambda b, i, j: (b, i, 0)),
            scratch_shapes=[
                pltpu.VMEM((q_tile, 1), jnp.float32),   # running row max
                pltpu.VMEM((q_tile, 1), jnp.float32),   # running row sum
                pltpu.VMEM((q_tile, d), jnp.float32),   # f32 output accumulator
            ],
        ),
        compiler_params=pltpu.CompilerParams(
            dimension_semantics=("parallel", "parallel", "arbitrary"),
            vmem_limit_bytes=64 * 1024 * 1024,
        ),
    )(q, k, v)

    if n_pad != n:
        out = out[:, :n, :]
    return out


def self_attention_ref(x, wq_t, wk_t, wv_t):
    """Pure-JAX f32 reference matching the PyTorch module semantics."""
    d = x.shape[-1]
    q = jnp.einsum("bnd,de->bne", x, wq_t)
    k = jnp.einsum("bnd,de->bne", x, wk_t)
    v = jnp.einsum("bnd,de->bne", x, wv_t)
    s = jnp.einsum("bnd,bmd->bnm", q, k)
    s = jax.nn.softmax(s, axis=-1) / math.sqrt(d)
    return jnp.einsum("bnm,bmd->bnd", s, v)


if __name__ == "__main__":
    key = jax.random.PRNGKey(0)
    kx, kq, kk, kv, kx2 = jax.random.split(key, 5)

    # d_model = 128 keeps every block lane-dense (multiple of 128).
    batch, n, d_model = 2, 8, 128

    x = jax.random.normal(kx, (batch, n, d_model), dtype=jnp.float32)
    bound = 1.0 / math.sqrt(d_model)
    wq_t = jax.random.uniform(kq, (d_model, d_model), jnp.float32, -bound, bound)
    wk_t = jax.random.uniform(kk, (d_model, d_model), jnp.float32, -bound, bound)
    wv_t = jax.random.uniform(kv, (d_model, d_model), jnp.float32, -bound, bound)

    # Small single-tile case.
    ref = self_attention_ref(x, wq_t, wk_t, wv_t)
    out = jax.block_until_ready(self_attention(x, wq_t, wk_t, wv_t))
    assert out.shape == (batch, n, d_model) and out.dtype == x.dtype
    # bf16 MXU operands with f32 accumulation -> small tolerance vs f32 ref.
    assert jnp.allclose(out, ref, atol=2e-2, rtol=2e-2), "mismatch (small shape)"

    # Longer, non-tile-aligned sequence: exercises q/kv tiling, padding and
    # key masking (q_tile=256, kv_tile=512, n=640 padded to 1024).
    n2 = 640
    x2 = jax.random.normal(kx2, (1, n2, d_model), dtype=jnp.float32)
    ref2 = self_attention_ref(x2, wq_t, wk_t, wv_t)
    out2 = jax.block_until_ready(self_attention(x2, wq_t, wk_t, wv_t))
    assert out2.shape == (1, n2, d_model)
    assert jnp.allclose(out2, ref2, atol=2e-2, rtol=2e-2), "mismatch (tiled shape)"

    print("KERNEL_OK")
</pallas_src>

<mosaic_0001>
module attributes {stable_mosaic.version = 11 : i64} {
  func.func @_qkv_proj_kernel(%arg0: i32, %arg1: i32, %arg2: memref<1x8x128xbf16, #tpu.memory_space<vmem>>, %arg3: memref<128x384xbf16, #tpu.memory_space<vmem>>, %arg4: memref<1x8x128xbf16, #tpu.memory_space<vmem>>, %arg5: memref<1x8x128xbf16, #tpu.memory_space<vmem>>, %arg6: memref<1x8x128xbf16, #tpu.memory_space<vmem>>) attributes {dimension_semantics = [#tpu.dimension_semantics<parallel>, #tpu.dimension_semantics<parallel>], iteration_bounds = array<i64: 2, 1>, scalar_prefetch = 0 : i64, scratch_operands = 0 : i64, tpu.core_type = #tpu.core_type<tc>, window_params = [{transform_indices = @transform_0, window_bounds = array<i64: 1, 8, 128>}, {pipeline_mode = #tpu.pipeline_mode<synchronous>, transform_indices = @transform_1, window_bounds = array<i64: 128, 384>}, {transform_indices = @transform_2, window_bounds = array<i64: 1, 8, 128>}, {transform_indices = @transform_3, window_bounds = array<i64: 1, 8, 128>}, {transform_indices = @transform_4, window_bounds = array<i64: 1, 8, 128>}]} {
    %c0 = arith.constant 0 : index
    %c0_0 = arith.constant 0 : index
    %c0_1 = arith.constant 0 : index
    %0 = vector.load %arg2[%c0, %c0_0, %c0_1] : memref<1x8x128xbf16, #tpu.memory_space<vmem>>, vector<1x8x128xbf16>
    %1 = vector.shape_cast %0 : vector<1x8x128xbf16> to vector<8x128xbf16>
    %c0_2 = arith.constant 0 : index
    %c0_3 = arith.constant 0 : index
    %2 = vector.load %arg3[%c0_2, %c0_3] : memref<128x384xbf16, #tpu.memory_space<vmem>>, vector<128x384xbf16>
    %cst = arith.constant dense<0.000000e+00> : vector<8x384xf32>
    %3 = tpu.matmul %1, %2, %cst {dimension_numbers = #tpu.dot_dimension_numbers<[1], [0], [0], [1], [0, 0, 1, 1], [], []>} : vector<8x128xbf16>, vector<128x384xbf16>, vector<8x384xf32> -> vector<8x384xf32>
    %4 = vector.extract_strided_slice %3 {offsets = [0, 0], sizes = [8, 128], strides = [1, 1]} : vector<8x384xf32> to vector<8x128xf32>
    %5 = arith.truncf %4 : vector<8x128xf32> to vector<8x128xbf16>
    %c0_4 = arith.constant 0 : index
    %c0_5 = arith.constant 0 : index
    %c0_6 = arith.constant 0 : index
    %6 = vector.load %arg4[%c0_4, %c0_5, %c0_6] : memref<1x8x128xbf16, #tpu.memory_space<vmem>>, vector<1x8x128xbf16>
    %7 = vector.shape_cast %6 : vector<1x8x128xbf16> to vector<8x128xbf16>
    %8 = vector.shape_cast %5 : vector<8x128xbf16> to vector<1x8x128xbf16>
    tpu.vector_store %arg4[%c0_4, %c0_5, %c0_6], %8 {strides = array<i32>} : memref<1x8x128xbf16, #tpu.memory_space<vmem>>, vector<1x8x128xbf16>,
    %9 = vector.extract_strided_slice %3 {offsets = [0, 128], sizes = [8, 128], strides = [1, 1]} : vector<8x384xf32> to vector<8x128xf32>
    %10 = arith.truncf %9 : vector<8x128xf32> to vector<8x128xbf16>
    %c0_7 = arith.constant 0 : index
    %c0_8 = arith.constant 0 : index
    %c0_9 = arith.constant 0 : index
    %11 = vector.load %arg5[%c0_7, %c0_8, %c0_9] : memref<1x8x128xbf16, #tpu.memory_space<vmem>>, vector<1x8x128xbf16>
    %12 = vector.shape_cast %11 : vector<1x8x128xbf16> to vector<8x128xbf16>
    %13 = vector.shape_cast %10 : vector<8x128xbf16> to vector<1x8x128xbf16>
    tpu.vector_store %arg5[%c0_7, %c0_8, %c0_9], %13 {strides = array<i32>} : memref<1x8x128xbf16, #tpu.memory_space<vmem>>, vector<1x8x128xbf16>,
    %14 = vector.extract_strided_slice %3 {offsets = [0, 256], sizes = [8, 128], strides = [1, 1]} : vector<8x384xf32> to vector<8x128xf32>
    %15 = arith.truncf %14 : vector<8x128xf32> to vector<8x128xbf16>
    %c0_10 = arith.constant 0 : index
    %c0_11 = arith.constant 0 : index
    %c0_12 = arith.constant 0 : index
    %16 = vector.load %arg6[%c0_10, %c0_11, %c0_12] : memref<1x8x128xbf16, #tpu.memory_space<vmem>>, vector<1x8x128xbf16>
    %17 = vector.shape_cast %16 : vector<1x8x128xbf16> to vector<8x128xbf16>
    %18 = vector.shape_cast %15 : vector<8x128xbf16> to vector<1x8x128xbf16>
    tpu.vector_store %arg6[%c0_10, %c0_11, %c0_12], %18 {strides = array<i32>} : memref<1x8x128xbf16, #tpu.memory_space<vmem>>, vector<1x8x128xbf16>,
    return
  }
  func.func @transform_0(%arg0: i32, %arg1: i32) -> (i32, i32, i32) {
    %c0_i32 = arith.constant 0 : i32
    %c0_i32_0 = arith.constant 0 : i32
    return %arg0, %arg1, %c0_i32 : i32, i32, i32
  }
  func.func @transform_1(%arg0: i32, %arg1: i32) -> (i32, i32) {
    %c0_i32 = arith.constant 0 : i32
    %c0_i32_0 = arith.constant 0 : i32
    %c0_i32_1 = arith.constant 0 : i32
    return %c0_i32, %c0_i32_0 : i32, i32
  }
  func.func @transform_2(%arg0: i32, %arg1: i32) -> (i32, i32, i32) {
    %c0_i32 = arith.constant 0 : i32
    %c0_i32_0 = arith.constant 0 : i32
    return %arg0, %arg1, %c0_i32 : i32, i32, i32
  }
  func.func @transform_3(%arg0: i32, %arg1: i32) -> (i32, i32, i32) {
    %c0_i32 = arith.constant 0 : i32
    %c0_i32_0 = arith.constant 0 : i32
    return %arg0, %arg1, %c0_i32 : i32, i32, i32
  }
  func.func @transform_4(%arg0: i32, %arg1: i32) -> (i32, i32, i32) {
    %c0_i32 = arith.constant 0 : i32
    %c0_i32_0 = arith.constant 0 : i32
    return %arg0, %arg1, %c0_i32 : i32, i32, i32
  }
}

</mosaic_0001>

<bundles_post_ra>
// kernel: tpu_custom_call.1
= control target key start
LH: loop header
LB: loop body
LE: loop exit
PB: predicated region body
PF: predicated region fallthrough
CT: control target
= control target key end

     0   :  { %s1442_s0 = inlined_call_operand.hbm [shape: bf16[2,8,128], index: 0, kind: input, shape index: {}]   ;;  %s1443_s1 = inlined_call_operand.hbm [shape: bf16[128,384], index: 1, kind: input, shape index: {}]   ;;  %s1444_s2 = inlined_call_operand.hbm [shape: bf16[2,8,128], index: 2, kind: output, shape index: {0}]   ;;  %s1445_s3 = inlined_call_operand.hbm [shape: bf16[2,8,128], index: 3, kind: output, shape index: {1}]   ;;  %s1446_s4 = inlined_call_operand.hbm [shape: bf16[2,8,128], index: 4, kind: output, shape index: {2}]  }
   0x1   :  { %1451 = sst [smem:[#allocation15_spill]] %s1442_s0 }
   0x2   :  { %10 = vsyncpa [#allocation3], 0 }
   0x3   :  { %12 = vsyncpa [#allocation3 + $0x1], 0 }
   0x4   :  { %13 = vsyncpa [#allocation6], 0 }
   0x5   :  { %14 = vsyncpa [#allocation4], 0 }
   0x6   :  { %16 = vsyncpa [#allocation4 + $0x1], 0 }
   0x7   :  { %17 = vsyncpa [#allocation9], 0 }
   0x8   :  { %19 = vsyncpa [#allocation9 + $0x1], 0  ;;  %s1157_s15 = smov 0   ;;  %s1159_s16 = smov 0  }
   0x9   :  { %s1161_s17 = smov 0   ;;  %s1163_s18 = smov 0  }
   0xa   :  { %s1165_s19 = smov 0   ;;  %s1167_s20 = smov 0  }
   0xb LB: > { %s1188_s21 = sadd.s32 4294967295, %s1120_s20   ;;  %s1450_s22 = sadd.s32 4294967294, %s1120_s20   ;;  %s1120_s20 = sphi %s1167_s20, %s25_s20   ;;  %s1116_s19 = sphi %s1165_s19, %s1473_s19   ;;  %s1112_s18 = sphi %s1163_s18, %s1472_s18   ;;  %s1108_s17 = sphi %s1161_s17, %s1471_s17   ;;  %s1104_s16 = sphi %s1159_s16, %s1470_s16   ;;  %s1100_s15 = sphi %s1157_s15, %s1469_s15  }
   0xc   : > { %p59_p0 = scmp.ne.s32.totalorder %s1104_s16, %s1100_s15  ;;  %p1447_p1 = scmp.eq.s32.totalorder %s1188_s21, 0 }
   0xd   : > { %p112_p3 = scmp.eq.s32.totalorder %s1450_s22, 1  ;;  %p724_p5 = scmp.ge.s32.totalorder %s1120_s20, 1 }
   0xe   : > { %p1199_p4 = por %p1447_p1, %p59_p0  ;;  %p175_p7 = scmp.lt.s32.totalorder %s1120_s20, 3 }
   0xf   : > { %p1204_p6 = por %p112_p3, %p59_p0  ;;  %s1122_s26 = smov [#allocation5]  }
  0x10   : > { %s1452_s23 = scalar_select %p1199_p4, 1, 0 }
  0x11   : > { %s1453_s24 = scalar_select %p1204_p6, 1, 0 }
  0x12   : > { %p1209_p8 = pnand %p724_p5, %p175_p7  ;;  %s187_s27 = sshll.u32 %s1122_s26, 4  ;;  %s188_s27 = int_to_ptr.vmem [resolvable:$true] %s187_s27 }
  0x13   : > { %s37_s29 = sadd.s32 1, %s1116_s19  ;;  %s916_s6 = scalar_lea.hbm %s1443_s1, 3072 }
  0x14   : > { %s1454_s25 = scalar_select %p1209_p8, 1, 0 }
  0x15   : > { %p808_p9 = pneg %p1209_p8  ;;  %p917_p12 = scmp.ne.s32.totalorder %s1443_s1, %s916_s6 }
  0x16   : > { %p923_p5 = scmp.lt.u32.totalorder %s916_s6, %s1443_s1 }
  0x17   : > { %p1218_p11 = pnand %p808_p9, %p1447_p1 }
  0x19   : > { %p918_p13 = pneg %p1218_p11 }
  0x1b   : > { %p919_p0 = pnand %p918_p13, %p917_p12 }
  0x1d   : > { %p920_p3 = pneg %p919_p0 }
  0x1f   : > { %p925_p7 = pnand %p923_p5, %p920_p3 }
  0x21   : > { %928 = shalt.err (!%p925_p7)
}
  0x22   : > { %s929_s11 = scalar_lea.vmem %s188_s27, 3072  ;;  %p937_p2 = scmp.lt.s32.totalorder %s188_s27, %s188_s27 }
  0x23   : > { %p930_p9 = scmp.ne.s32.totalorder %s188_s27, %s929_s11  ;;  %p938_p6 = scmp.lt.s32.totalorder %s929_s11, %s929_s11 }
  0x25   : > { %p932_p10 = pnand %p930_p9, %p918_p13  ;;  %p939_p4 = por %p938_p6, %p937_p2 }
  0x27   : > { %p933_p1 = pneg %p932_p10 }
  0x29   : > { %p940_p8 = pnand %p939_p4, %p933_p1 }
  0x2b   : > { %943 = shalt.err (!%p940_p8)
}
  0x2c   : > { %s1123_s12 = smov 192   ;;  %s1124_s13 = smov 12  }
  0x2d   : > { %811 = dma.hbm_to_vmem [thread:$0]  (!%p1218_p11), %s1443_s1, 3072, %s188_s27, [#allocation6], %s1123_s12, %s1123_s12, %s1124_s13  }
  0x2e   : > { %p39_p1 = scmp.ge.s32.totalorder %s37_s29, 2  ;;  %s46_s30 = sadd.s32 1, %s1108_s17 }
  0x2f   : > { %p53_p2 = scmp.ne.s32.totalorder %s1108_s17, %s1104_s16  ;;  %p54_p4 = scmp.eq.s32.totalorder %s1120_s20, 0 }
  0x30   : > { %s1475_s29 = smov (%p39_p1, %s37_s29), 0  ;;  %p1457_p8 = scmp.eq.s32.totalorder %s1188_s21, 1 }
  0x31   : > { %p1245_p6 = por %p54_p4, %p53_p2  ;;  %s41_s28 = ssub.s32 %s1116_s19, %s1475_s29 }
  0x32   : > { %p1251_p10 = por %p1457_p8, %p53_p2  ;;  %p827_p12 = scmp.lt.s32.totalorder %s1120_s20, 2 }
  0x33   : > { %p44_p11 = scmp.eq.s32.totalorder %s41_s28, 0  ;;  %s201_s27 = sand.u32 1, %s1108_s17  }
  0x34   : > { %s727_s7 = sshll.u32 %s201_s27, 2  ;;  %s728_s9 = sshll.u32 %s1116_s19, 6 }
  0x35   : > { %s1260_s8 = scalar_select %p44_p11, %s1108_s17, %s46_s30  }
  0x36   : > { %s1459_s0 = sld [smem:[#allocation15_spill]]  ;;  %s205_s13 = scalar_lea.vmem [#allocation2], %s727_s7 }
  0x37   : > { %s213_s14 = sshll.u32 %s205_s13, 4  ;;  %p1272_p13 = pnand %p827_p12, %p1245_p6  ;;  %s1268_s14 = int_to_ptr.vmem [resolvable:$true] %s213_s14 }
  0x38   : > { %s202_s30 = scalar_lea.sflag [#allocation3], %s201_s27 }
  0x39   : > { %p946_p3 = pneg %p1272_p13 }
  0x3c   : > { %s1266_s12 = scalar_lea.hbm %s1459_s0, %s728_s9  ;;  %s949_s10 = scalar_lea.hbm %s1459_s0, 128 }
  0x3d   : > { %s944_s28 = scalar_lea.hbm %s1266_s12, 64  ;;  %p950_p9 = scmp.lt.u32.totalorder %s1266_s12, %s1459_s0 }
  0x3e   : > { %p945_p0 = scmp.ne.s32.totalorder %s1266_s12, %s944_s28  ;;  %p951_p1 = scmp.lt.u32.totalorder %s949_s10, %s944_s28 }
  0x3f   : > { %p953_p4 = scmp.lt.u32.totalorder %s944_s28, %s1266_s12 }
  0x40   : > { %p947_p5 = pnand %p946_p3, %p945_p0  ;;  %p952_p2 = por %p951_p1, %p950_p9 }
  0x42   : > { %p948_p7 = pneg %p947_p5  ;;  %p954_p6 = por %p953_p4, %p952_p2 }
  0x44   : > { %p955_p8 = pnand %p954_p6, %p948_p7 }
  0x46   : > { %958 = shalt.err (!%p955_p8)
}
  0x47   : > { %s959_s27 = scalar_lea.vmem %s1268_s14, 64  ;;  %s1125_s13 = smov [#allocation2]  }
  0x48   : > { %p960_p12 = scmp.ne.s32.totalorder %s1268_s14, %s959_s27  ;;  %s964_s7 = sshll.u32 %s1125_s13, 4  ;;  %s965_s7 = int_to_ptr.vmem [resolvable:$false] %s964_s7 }
  0x49   : > { %s966_s9 = scalar_lea.vmem %s965_s7, 128  ;;  %p967_p5 = scmp.lt.s32.totalorder %s1268_s14, %s965_s7 }
  0x4a   : > { %p962_p11 = pnand %p960_p12, %p946_p3  ;;  %p968_p9 = scmp.lt.s32.totalorder %s966_s9, %s959_s27 }
  0x4c   : > { %p963_p0 = pneg %p962_p11  ;;  %p969_p1 = por %p968_p9, %p967_p5 }
  0x4e   : > { %p970_p2 = pnand %p969_p1, %p963_p0 }
  0x50   : > { %973 = shalt.err (!%p970_p2)
}
  0x51   : > { %815 = dma.hbm_to_vmem [thread:$0]  (!%p1272_p13), %s1266_s12, 64, %s1268_s14, %s202_s30  }
  0x52   : > { %p1461_p7 = scmp.ne.s32.totalorder %s1454_s25, 0 }
  0x53   : > { %s1304_s28 = sand.u32 (!%p1461_p7), 1, %s1104_s16   ;;  %p1462_p3 = scmp.ne.s32.totalorder (!%p1461_p7), %s1452_s23, 0 }
  0x54   : > { %222 = sbr.rel (%p1461_p7) target bundleno = 404 (0x194), region = 28  ;;  %s1307_s10 = sshll.u32 (!%p1461_p7), %s1304_s28, 2 }
  0x55   : > { %s225_s5 = scalar_lea.sflag (!%p1461_p7), [#allocation3], %s1304_s28  ;;  %s228_s11 = scalar_lea.vmem (!%p1461_p7), [#allocation2], %s1307_s10 }
  0x5b   : > { %1083 = dma.done.wait (%p1462_p3), %s225_s5, 64  }
  0x5c   : > { %1085 = vsyncadd (%p1462_p3), %s225_s5, 4294967232  ;;  %p1463_p13 = scmp.eq.s32.totalorder %s1188_s21, 0 }
  0x5e   : > { %1087 = dma.done.wait (%p1463_p13), [#allocation6], 3072   ;;  %p1464_p4 = pmov %p1463_p13 }
  0x5f   : > { %v1126_v0 = vmov 0.0   ;;  %vm1127_vm0 = vmmov 0   ;;  %v1128_v1 = vmov 0   ;;  %v884_v2 = vld [vmem:[#allocation5 + $0x4] ss:$12 sps:$4 sm:$0xff]   ;;  %s762_s25 = sshll.u32 %s1112_s18, 6 }
  0x60   : > { %1089 = vsyncadd (%p1464_p4), [#allocation6], 4294964224  ;;  %776 = vmatprep.subr.bf16.mxu1 %v1126_v0  ;;  %792 = vmatprep.mubr.msk.bf16.mxu1 %vm1127_vm0, %v1126_v0  ;;  %v886_v3 = vld [vmem:[#allocation5 + $0x8] ss:$12 sps:$4 sm:$0xff]   ;;  %v887_v4 = vld [vmem:[#allocation5] ss:$12 sps:$4 sm:$0xff]   ;;  %s1329_s5 = scalar_lea.hbm %s1444_s2, %s762_s25  ;;  %s1343_s22 = scalar_lea.hbm %s1446_s4, %s762_s25 }
  0x61   : > { %461 = vmatprep.mubr.bf16.mxu0 %v1128_v1  ;;  %429 = vmatprep.subr.bf16.mxu0 %v884_v2  ;;  %v888_v5 = vld [vmem:[#allocation5 + $0x1c] ss:$12 sps:$4 sm:$0xff]   ;;  %v890_v6 = vld [vmem:[#allocation5 + $0x20] ss:$12 sps:$4 sm:$0xff]   ;;  %v891_v7 = vld [vmem:[#allocation5 + $0x18] ss:$12 sps:$4 sm:$0xff]  }
  0x62   : > { %777 = vmatpush3.bf16.msra.mxu1 %v886_v3  ;;  %430 = vmatpush1.bf16.msra.mxu0 %v887_v4  ;;  %v892_v8 = vld [vmem:[#allocation5 + $0x34] ss:$12 sps:$4 sm:$0xff]   ;;  %v894_v9 = vld [vmem:[#allocation5 + $0x38] ss:$12 sps:$4 sm:$0xff]   ;;  %v895_v10 = vld [vmem:[#allocation5 + $0x30] ss:$12 sps:$4 sm:$0xff]  }
  0x63   : > { %778 = vmatprep.subr.bf16.mxu1 %v1126_v0  ;;  %431 = vmatprep.subr.bf16.mxu0 %v888_v5  ;;  %v896_v11 = vld [vmem:[#allocation5 + $0x4c] ss:$12 sps:$4 sm:$0xff]   ;;  %v898_v12 = vld [vmem:[#allocation5 + $0x50] ss:$12 sps:$4 sm:$0xff]   ;;  %v899_v13 = vld [vmem:[#allocation5 + $0x48] ss:$12 sps:$4 sm:$0xff]  }
  0x64   : > { %v900_v14 = vld [vmem:[#allocation5 + $0x64] ss:$12 sps:$4 sm:$0xff]   ;;  %v902_v15 = vld [vmem:[#allocation5 + $0x68] ss:$12 sps:$4 sm:$0xff]   ;;  %v903_v16 = vld [vmem:[#allocation5 + $0x60] ss:$12 sps:$4 sm:$0xff]  }
  0x65   : > { %v904_v17 = vld [vmem:[#allocation5 + $0x7c] ss:$12 sps:$4 sm:$0xff]   ;;  %v906_v18 = vld [vmem:[#allocation5 + $0x80] ss:$12 sps:$4 sm:$0xff]   ;;  %v907_v19 = vld [vmem:[#allocation5 + $0x78] ss:$12 sps:$4 sm:$0xff]  }
  0x66   : > { %779 = vmatpush3.bf16.msra.mxu1 %v890_v6  ;;  %432 = vmatpush1.bf16.msra.mxu0 %v891_v7  ;;  %v908_v20 = vld [vmem:[#allocation5 + $0x94] ss:$12 sps:$4 sm:$0xff]   ;;  %v910_v21 = vld [vmem:[#allocation5 + $0x98] ss:$12 sps:$4 sm:$0xff]   ;;  %v911_v22 = vld [vmem:[#allocation5 + $0x90] ss:$12 sps:$4 sm:$0xff]  }
  0x67   : > { %780 = vmatprep.subr.bf16.mxu1 %v1126_v0  ;;  %433 = vmatprep.subr.bf16.mxu0 %v892_v8  ;;  %v912_v23 = vld [vmem:[#allocation5 + $0xac] ss:$12 sps:$4 sm:$0xff]   ;;  %v914_v24 = vld [vmem:[#allocation5 + $0xb0] ss:$12 sps:$4 sm:$0xff]   ;;  %v915_v25 = vld [vmem:[#allocation5 + $0xa8] ss:$12 sps:$4 sm:$0xff]  }
  0x68   : > { %v268_v26 = vld [vmem:[%s228_s11] sm:$0xf]  ;;  %s252_s12 = scalar_lea.vmem [#allocation7], %s1307_s10  ;;  %s266_s26 = scalar_lea.vmem [#allocation10], %s1307_s10 }
  0x69   : > { %s541_s14 = sshll.u32 %s252_s12, 4  ;;  %s569_s30 = sshll.u32 %s266_s26, 4  ;;  %s1331_s14 = int_to_ptr.vmem [resolvable:$true] %s541_s14  ;;  %s1345_s30 = int_to_ptr.vmem [resolvable:$true] %s569_s30 }
  0x6a   : > { %781 = vmatpush3.bf16.msra.mxu1 %v894_v9  ;;  %434 = vmatpush1.bf16.msra.mxu0 %v895_v10  ;;  %s259_s27 = scalar_lea.vmem [#allocation8], %s1307_s10  ;;  %s1336_s11 = scalar_lea.hbm %s1445_s3, %s762_s25 }
  0x6b   : > { %782 = vmatprep.subr.bf16.mxu1 %v1126_v0  ;;  %435 = vmatprep.subr.bf16.mxu0 %v896_v11  ;;  %s555_s13 = sshll.u32 %s259_s27, 4  ;;  %s974_s23 = scalar_lea.vmem %s1331_s14, 64  ;;  %s1338_s13 = int_to_ptr.vmem [resolvable:$true] %s555_s13 }
  0x6c   : > { %p975_p6 = scmp.ne.s32.totalorder %s1331_s14, %s974_s23  ;;  %s1129_s18 = smov [#allocation7]  }
  0x6d   : > { %s978_s10 = sshll.u32 %s1129_s18, 4  ;;  %s979_s10 = int_to_ptr.vmem [resolvable:$false] %s978_s10 }
  0x6e   : > { %783 = vmatpush3.bf16.msra.mxu1 %v898_v12  ;;  %436 = vmatpush1.bf16.msra.mxu0 %v899_v13  ;;  %p976_p8 = pnand %p975_p6, %p1251_p10  ;;  %s980_s0 = scalar_lea.vmem %s979_s10, 128 }
  0x6f   : > { %784 = vmatprep.subr.bf16.mxu1 %v1126_v0  ;;  %437 = vmatprep.subr.bf16.mxu0 %v900_v14  ;;  %p981_p11 = scmp.lt.s32.totalorder %s1331_s14, %s979_s10  ;;  %p982_p0 = scmp.lt.s32.totalorder %s980_s0, %s974_s23 }
  0x70   : > { %p977_p12 = pneg %p976_p8 }
  0x71   : > { %p983_p5 = por %p982_p0, %p981_p11 }
  0x72   : > { %785 = vmatpush3.bf16.msra.mxu1 %v902_v15  ;;  %438 = vmatpush1.bf16.msra.mxu0 %v903_v16 }
  0x73   : > { %786 = vmatprep.subr.bf16.mxu1 %v1126_v0  ;;  %439 = vmatprep.subr.bf16.mxu0 %v904_v17  ;;  %p984_p9 = pnand %p983_p5, %p977_p12 }
  0x76   : > { %787 = vmatpush3.bf16.msra.mxu1 %v906_v18  ;;  %440 = vmatpush1.bf16.msra.mxu0 %v907_v19 }
  0x77   : > { %788 = vmatprep.subr.bf16.mxu1 %v1126_v0  ;;  %441 = vmatprep.subr.bf16.mxu0 %v908_v20 }
  0x7a   : > { %789 = vmatpush3.bf16.msra.mxu1 %v910_v21  ;;  %442 = vmatpush1.bf16.msra.mxu0 %v911_v22 }
  0x7b   : > { %790 = vmatprep.subr.bf16.mxu1 %v1126_v0  ;;  %443 = vmatprep.subr.bf16.mxu0 %v912_v23 }
  0x7e   : > { %791 = vmatpush3.bf16.msra.mxu1 %v914_v24  ;;  %444 = vmatpush1.bf16.msra.mxu0 %v915_v25 }
  0x81   : > { %793 = vmatmul.mubr.bf16.vlgmr.msra.gmra.mrb[0].mxu1 %v268_v26  ;;  %462 = vmatmul.mubr.bf16.vlgmr.msra.gmra.mrb[0].mxu0 %v268_v26 }
 0x154   : > { %v504_v27 = vpop.f32.mrb[0].mxu1  ;;  %v463_v29 = vpop.f32.mrb[0].mxu0 }
 0x155   : > { %v514_v28 = vpack.c.bf16 %v504_v27, %v504_v27  ;;  %v794_v30 = vpop.f32.mrb[1].mxu1  ;;  %v510_v31 = vpack.c.bf16 %v463_v29, %v463_v29  ;;  %v465_v32 = vpop.f32.mrb[1].mxu0 }
 0x156   : > { %v507_v33 = vpop.f32.mrb[2].mxu1  ;;  %v512_v34 = vpack.c.bf16 %v465_v32, %v465_v32  ;;  %v467_v35 = vpop.f32.mrb[2].mxu0 }
 0x157   : > { %515 = vst [vmem:[%s266_s26] sm:$0xf] %v514_v28  ;;  %v795_v36 = vpop.f32.mrb[3].mxu1  ;;  %511 = vst [vmem:[%s252_s12] sm:$0xf] %v510_v31  ;;  %v468_v37 = vpop.f32.mrb[3].mxu0  ;;  %s517_s26 = scalar_lea.sflag [#allocation4], %s1304_s28 }
 0x158   : > { %513 = vst [vmem:[%s259_s27] sm:$0xf] %v512_v34 }
 0x159   : > { %987 = shalt.err (!%p984_p9)
}
 0x15a   : > { %s988_s28 = scalar_lea.hbm %s1329_s5, 64  ;;  %s992_s27 = scalar_lea.hbm %s1444_s2, 128 }
 0x15b   : > { %p989_p1 = scmp.ne.s32.totalorder %s1329_s5, %s988_s28  ;;  %p993_p3 = scmp.lt.u32.totalorder %s1329_s5, %s1444_s2 }
 0x15c   : > { %p994_p13 = scmp.lt.u32.totalorder %s992_s27, %s988_s28  ;;  %p996_p6 = scmp.lt.u32.totalorder %s988_s28, %s1329_s5 }
 0x15d   : > { %p990_p2 = pnand %p989_p1, %p1251_p10 }
 0x15e   : > { %p995_p4 = por %p994_p13, %p993_p3 }
 0x15f   : > { %p991_p7 = pneg %p990_p2 }
 0x160   : > { %p997_p8 = por %p996_p6, %p995_p4 }
 0x162   : > { %p998_p12 = pnand %p997_p8, %p991_p7 }
 0x164   : > { %1001 = shalt.err (!%p998_p12)
}
 0x165   : > { %802 = dma.vmem_to_hbm [thread:$0]  (%p1251_p10), %s1331_s14, 64, %s1329_s5, %s517_s26  }
 0x166   : > { %s1465_s0 = sand.u32 1, %s1188_s21   ;;  %s1002_s18 = scalar_lea.vmem %s1338_s13, 64 }
 0x167   : > { %s1371_s23 = scalar_lea.sflag [#allocation9], %s1465_s0  ;;  %p1003_p11 = scmp.ne.s32.totalorder %s1338_s13, %s1002_s18 }
 0x168   : > { %s1130_s10 = smov [#allocation8]  }
 0x169   : > { %p1004_p0 = pnand %p1003_p11, %p1251_p10  ;;  %s1006_s28 = sshll.u32 %s1130_s10, 4  ;;  %s1007_s28 = int_to_ptr.vmem [resolvable:$false] %s1006_s28 }
 0x16a   : > { %s1008_s25 = scalar_lea.vmem %s1007_s28, 128  ;;  %p1009_p9 = scmp.lt.s32.totalorder %s1338_s13, %s1007_s28 }
 0x16b   : > { %p1005_p5 = pneg %p1004_p0  ;;  %p1010_p1 = scmp.lt.s32.totalorder %s1008_s25, %s1002_s18 }
 0x16d   : > { %p1011_p2 = por %p1010_p1, %p1009_p9 }
 0x16f   : > { %p1012_p7 = pnand %p1011_p2, %p1005_p5 }
 0x171   : > { %1015 = shalt.err (!%p1012_p7)
}
 0x172   : > { %s1016_s21 = scalar_lea.hbm %s1336_s11, 64  ;;  %s1020_s26 = scalar_lea.hbm %s1445_s3, 128 }
 0x173   : > { %p1017_p3 = scmp.ne.s32.totalorder %s1336_s11, %s1016_s21  ;;  %p1021_p6 = scmp.lt.u32.totalorder %s1336_s11, %s1445_s3 }
 0x174   : > { %p1022_p8 = scmp.lt.u32.totalorder %s1020_s26, %s1016_s21  ;;  %p1024_p11 = scmp.lt.u32.totalorder %s1016_s21, %s1336_s11 }
 0x175   : > { %p1018_p13 = pnand %p1017_p3, %p1251_p10 }
 0x176   : > { %p1023_p12 = por %p1022_p8, %p1021_p6 }
 0x177   : > { %p1019_p4 = pneg %p1018_p13 }
 0x178   : > { %p1025_p0 = por %p1024_p11, %p1023_p12 }
 0x17a   : > { %p1026_p5 = pnand %p1025_p0, %p1019_p4 }
 0x17c   : > { %1029 = shalt.err (!%p1026_p5)
}
 0x17d   : > { %803 = dma.vmem_to_hbm [thread:$0]  (%p1251_p10), %s1338_s13, 64, %s1336_s11, %s1371_s23  }
 0x17e   : > { %s1030_s7 = scalar_lea.vmem %s1345_s30, 64  ;;  %s1131_s9 = smov [#allocation10]  }
 0x17f   : > { %p1031_p9 = scmp.ne.s32.totalorder %s1345_s30, %s1030_s7  ;;  %s1034_s0 = sshll.u32 %s1131_s9, 4  ;;  %s1035_s0 = int_to_ptr.vmem [resolvable:$false] %s1034_s0 }
 0x180   : > { %s1036_s18 = scalar_lea.vmem %s1035_s0, 128  ;;  %p1037_p7 = scmp.lt.s32.totalorder %s1345_s30, %s1035_s0 }
 0x181   : > { %p1032_p1 = pnand %p1031_p9, %p1251_p10  ;;  %p1038_p3 = scmp.lt.s32.totalorder %s1036_s18, %s1030_s7 }
 0x183   : > { %p1033_p2 = pneg %p1032_p1  ;;  %p1039_p13 = por %p1038_p3, %p1037_p7 }
 0x185   : > { %p1040_p4 = pnand %p1039_p13, %p1033_p2 }
 0x187   : > { %1043 = shalt.err (!%p1040_p4)
}
 0x188   : > { %s1044_s13 = scalar_lea.hbm %s1343_s22, 64  ;;  %s1048_s28 = scalar_lea.hbm %s1446_s4, 128 }
 0x189   : > { %p1045_p6 = scmp.ne.s32.totalorder %s1343_s22, %s1044_s13  ;;  %p1049_p11 = scmp.lt.u32.totalorder %s1343_s22, %s1446_s4 }
 0x18a   : > { %p1050_p0 = scmp.lt.u32.totalorder %s1048_s28, %s1044_s13  ;;  %p1052_p9 = scmp.lt.u32.totalorder %s1044_s13, %s1343_s22 }
 0x18b   : > { %p1046_p8 = pnand %p1045_p6, %p1251_p10 }
 0x18c   : > { %p1051_p5 = por %p1050_p0, %p1049_p11 }
 0x18d   : > { %p1047_p12 = pneg %p1046_p8 }
 0x18e   : > { %p1053_p1 = por %p1052_p9, %p1051_p5 }
 0x190   : > { %p1054_p2 = pnand %p1053_p1, %p1047_p12 }
 0x192   : > { %1057 = shalt.err (!%p1054_p2)
}
 0x193   : > { %804 = dma.vmem_to_hbm [thread:$0]  (%p1251_p10), %s1345_s30, 64, %s1343_s22, %s1371_s23  }
 0x194 PF: > { %s581_s14 = sand.u32 1, %s1100_s15   ;;  %p1466_p7 = scmp.ne.s32.totalorder %s1453_s24, 0 }
 0x195   : > { %p1467_p3 = scmp.ge.s32.totalorder %s1120_s20, 2  ;;  %s582_s5 = scalar_lea.sflag [#allocation4], %s581_s14 }
 0x197   : > { %p817_p13 = pnand %p1467_p3, %p1466_p7 }
 0x199   : > { %1091 = dma.done.wait (!%p817_p13), %s582_s5, 64  }
 0x19a   : > { %1093 = vsyncadd (!%p817_p13), %s582_s5, 4294967232  ;;  %s1468_s26 = sadd.s32 4294967294, %s1120_s20  }
 0x19b   : > { %s590_s12 = sand.u32 1, %s1468_s26  }
 0x19c   : > { %s591_s27 = scalar_lea.sflag [#allocation9], %s590_s12 }
 0x19d   : > { %1095 = dma.done.wait (!%p817_p13), %s591_s27, 128  }
 0x19e   : > { %1097 = vsyncadd (!%p817_p13), %s591_s27, 4294967168  ;;  %s25_s20 = sadd.s32 1, %s1120_s20   ;;  %s1469_s15 = smov %s1104_s16 }
 0x19f   : > { %p22_p10 = scmp.ge.s32.totalorder %s25_s20, 4   ;;  %s1470_s16 = smov %s1108_s17 }
 0x1a0   : > { %s1471_s17 = smov %s1260_s8  ;;  %s1472_s18 = smov %s1116_s19 }
 0x1a1   : > { %s1473_s19 = smov %s1475_s29  ;;  %24 = sbr.rel (!%p22_p10) target bundleno = 11 (0xb), region = 109 }
 0x1a8   :  { %605 = vsyncpa [#allocation3], 1 }
 0x1a9   :  { %607 = vsyncpa [#allocation3 + $0x1], 1 }
 0x1aa   :  { %608 = vsyncpa [#allocation6], 1 }
 0x1ab   :  { %609 = vsyncpa [#allocation4], 1 }
 0x1ac   :  { %611 = vsyncpa [#allocation4 + $0x1], 1 }
 0x1ad   :  { %612 = vsyncpa [#allocation9], 1 }
 0x1ae   :  { %614 = vsyncpa [#allocation9 + $0x1], 1 }

</bundles_post_ra>
